<compile_context>
chip_gen: v7x
topology: tpu7x:2x2x1
jax: 0.10.0
libtpu: 0.0.40
codegen_flags: <defaults>
</compile_context>

<pallas_src>
import jax
import jax.numpy as jnp
from jax import lax
from jax.experimental import pallas as pl
from jax.experimental.pallas import tpu as pltpu

_LANE = 128     # vreg lane width
_SUBLANE = 8    # vreg sublane count (f32)


def _round_up(n, m):
    return ((n + m - 1) // m) * m


def _mlp_kernel(x_ref,
                w1_ref, b1_ref,
                w2_ref, b2_ref,
                w3_ref, b3_ref,
                w4_ref, b4_ref,
                w5t_ref, b5_ref,
                ot_ref):
    """Fused 5-layer MLP forward for one batch tile; weights VMEM-resident.

    Hidden layers: (bt, K) x (K, N) MXU matmuls with f32 accumulation, bias
    add + ReLU on the VPU in f32, then cast back to the weight dtype so every
    matmul runs at the MXU's native (bf16) rate.

    Final layer is computed transposed: contract `hidden` of (n_out, hidden)
    against `hidden` of (bt, hidden) -> (n_out, bt).  Batch lands on the lane
    axis, so the (n_out, bt) store is lane-dense with no output padding.
    """
    h = x_ref[...]                                     # (bt, F) compute dtype

    def hidden_layer(h, w_ref, b_ref):
        y = jnp.dot(h, w_ref[...], preferred_element_type=jnp.float32)
        y = jnp.maximum(y + b_ref[...], 0.0)           # bias + ReLU in f32
        return y.astype(w_ref.dtype)                   # back to compute dtype

    h = hidden_layer(h, w1_ref, b1_ref)    # hidden_1 + relu
    h = hidden_layer(h, w2_ref, b2_ref)    # hidden_2 + relu_2
    h = hidden_layer(h, w3_ref, b3_ref)    # hidden_3 + relu_3
    h = hidden_layer(h, w4_ref, b4_ref)    # hidden_4 + relu_4

    # predict (no activation), transposed: (n_out, hidden) . (bt, hidden)^T
    out_t = lax.dot_general(
        w5t_ref[...], h,
        dimension_numbers=(((1,), (1,)), ((), ())),
        preferred_element_type=jnp.float32)            # (n_out, bt) f32
    out_t = out_t + b5_ref[...]                        # b5 is (n_out, 1) f32
    ot_ref[...] = out_t.astype(ot_ref.dtype)           # lane-dense store


def _pick_batch_tile(B, batch_tile):
    """Large MXU-aligned batch tile, but keep >= 8 grid steps when possible
    (>= 4 per v7x TensorCore) so the x/out pipeline stays double-buffered."""
    B8 = _round_up(max(B, 1), _SUBLANE)
    bt = min(_round_up(batch_tile, _SUBLANE), B8)
    while bt > 256 and pl.cdiv(B8, bt) < 8:
        bt = _round_up(bt // 2, _SUBLANE)
    return max(bt, _SUBLANE)


def neural_net_forward(x, params, *, batch_tile=1024,
                       compute_dtype=jnp.bfloat16,
                       single_buffer_weights=True):
    """Fused forward pass of NeuralNet.

    x:      [B, F] float array.
    params: list of 5 (w, b) pairs; w: [in, out], b: [1, out], float32.
    Returns [B, n_out] float32.

    compute_dtype=bfloat16 (default) halves input/weight HBM traffic and uses
    the MXU's native bf16 rate; accumulation/bias/ReLU stay in f32.  Expect a
    small (~1e-2-scale) delta vs a full-f32 reference; use jnp.float32 for
    bit-closer results.
    """
    B, F = x.shape
    hidden = params[0][0].shape[1]
    n_out = params[-1][0].shape[1]
    out_dtype = jnp.float32

    bt = _pick_batch_tile(B, batch_tile)
    B_pad = _round_up(B, bt)
    x_pad = x if B_pad == B else jnp.pad(x, ((0, B_pad - B), (0, 0)))
    x_pad = x_pad.astype(compute_dtype)

    # Weights in compute dtype; biases stay f32 (tiny, used in f32 epilogue).
    # Final layer stored transposed: w5t [n_out, hidden], b5 [n_out, 1].
    flat = []
    for i, (w, b) in enumerate(params):
        if i < len(params) - 1:
            flat += [w.astype(compute_dtype), b.astype(jnp.float32)]
        else:
            flat += [w.T.astype(compute_dtype),
                     b.reshape(n_out, 1).astype(jnp.float32)]

    grid = (B_pad // bt,)

    def build(single_buffer):
        def const_spec(shape):
            # Constant index_map: pipeline never re-fetches these blocks;
            # Buffered(1) additionally drops the unused second VMEM copy.
            if single_buffer:
                return pl.BlockSpec(shape, lambda i: (0, 0),
                                    pipeline_mode=pl.Buffered(1))
            return pl.BlockSpec(shape, lambda i: (0, 0))

        in_specs = [pl.BlockSpec((bt, F), lambda i: (i, 0))]
        for a in flat:
            in_specs.append(const_spec(a.shape))
        out_specs = pl.BlockSpec((n_out, bt), lambda i: (0, i))

        # VMEM budget: double-buffered x/out tiles + weight copies + live f32
        # activations.  Terms already count buffer multiplicity (no 2x hedge);
        # cap well under physical VMEM (v7x has only 64 MiB per TensorCore).
        w_bufs = 1 if single_buffer else 2
        needed = (2 * bt * F * x_pad.dtype.itemsize
                  + 2 * n_out * bt * jnp.dtype(out_dtype).itemsize
                  + w_bufs * sum(a.size * a.dtype.itemsize for a in flat)
                  + 4 * bt * max(hidden, n_out) * 4)
        try:
            vmem_cap = int(pltpu.get_tpu_info().vmem_capacity_bytes * 0.85)
        except Exception:
            vmem_cap = 48 << 20
        vmem_limit = int(min(max(needed + (2 << 20), 16 << 20), vmem_cap))

        return pl.pallas_call(
            _mlp_kernel,
            out_shape=jax.ShapeDtypeStruct((n_out, B_pad), out_dtype),
            grid_spec=pltpu.PrefetchScalarGridSpec(
                num_scalar_prefetch=0,
                grid=grid,
                in_specs=in_specs,
                out_specs=out_specs,
            ),
            compiler_params=pltpu.CompilerParams(
                dimension_semantics=("parallel",),   # batch tiles over v7x TCs
                vmem_limit_bytes=vmem_limit,
            ),
        )

    use_single = single_buffer_weights and hasattr(pl, "Buffered")
    if use_single:
        try:
            out_t = build(True)(x_pad, *flat)
        except pltpu.LoweringException:
            # Narrow fallback: only if Buffered(1) itself fails to lower.
            out_t = build(False)(x_pad, *flat)
    else:
        out_t = build(False)(x_pad, *flat)

    # (n_out, B_pad) -> (B, n_out); strip batch padding.
    return out_t.T[:B, :]


def init_params(key, number_features, dimensions_hidden, number_output=1):
    """Deterministic init matching the layer shapes of NeuralNet.__init__."""
    dims = [(number_features, dimensions_hidden),
            (dimensions_hidden, dimensions_hidden),
            (dimensions_hidden, dimensions_hidden),
            (dimensions_hidden, dimensions_hidden),
            (dimensions_hidden, number_output)]
    params = []
    for i, (fan_in, fan_out) in enumerate(dims):
        kw, kb, key = jax.random.split(jax.random.fold_in(key, i), 3)
        bound = 1.0 / jnp.sqrt(fan_in)  # PyTorch Linear default init range
        w = jax.random.uniform(kw, (fan_in, fan_out), jnp.float32, -bound, bound)
        b = jax.random.uniform(kb, (1, fan_out), jnp.float32, -bound, bound)
        params.append((w, b))
    return params


def reference_forward(x, params):
    """Full-f32 reference equivalent to the PyTorch module."""
    h = x
    for i, (w, b) in enumerate(params):
        h = jnp.dot(h, w, precision=lax.Precision.HIGHEST) + b
        if i < len(params) - 1:
            h = jnp.maximum(h, 0.0)
    return h


def reference_forward_quantized(x, params, compute_dtype):
    """f32-math reference over the same quantized inputs the kernel uses."""
    h = x.astype(compute_dtype).astype(jnp.float32)
    for i, (w, b) in enumerate(params):
        wq = w.astype(compute_dtype).astype(jnp.float32)
        h = jnp.dot(h, wq, precision=lax.Precision.HIGHEST) + b
        if i < len(params) - 1:
            h = jnp.maximum(h, 0.0).astype(compute_dtype).astype(jnp.float32)
    return h


if __name__ == "__main__":
    key = jax.random.PRNGKey(0)
    number_features = 16
    dimensions_hidden = 32
    number_output = 1
    batch = 2048   # -> bt=256, grid=8 (>= 4 steps per v7x TensorCore)

    kx, kp = jax.random.split(key)
    x = jax.random.normal(kx, (batch, number_features), jnp.float32)
    params = init_params(kp, number_features, dimensions_hidden, number_output)

    out = neural_net_forward(x, params)           # bf16 compute (default)
    out = jax.block_until_ready(out)
    assert out.shape == (batch, number_output)

    # Tight check: f32-math reference over the same bf16-quantized weights/x
    # (kernel differs only by f32 accumulation order on the MXU).
    ref_q = reference_forward_quantized(x, params, jnp.bfloat16)
    err_q = float(jnp.max(jnp.abs(out - ref_q)))
    assert jnp.allclose(out, ref_q, atol=1e-3, rtol=1e-3), err_q

    # Loose sanity check vs the full-f32 PyTorch-equivalent reference
    # (delta here is the expected bf16 quantization of inputs/weights).
    ref = reference_forward(x, params)
    err = float(jnp.max(jnp.abs(out - ref)))
    assert jnp.allclose(out, ref, atol=5e-2, rtol=5e-2), err

    print("KERNEL_OK")
</pallas_src>

<mosaic_0001>
module attributes {stable_mosaic.version = 11 : i64} {
  func.func @_mlp_kernel(%arg0: i32, %arg1: memref<256x16xbf16, #tpu.memory_space<vmem>>, %arg2: memref<16x32xbf16, #tpu.memory_space<vmem>>, %arg3: memref<1x32xf32, #tpu.memory_space<vmem>>, %arg4: memref<32x32xbf16, #tpu.memory_space<vmem>>, %arg5: memref<1x32xf32, #tpu.memory_space<vmem>>, %arg6: memref<32x32xbf16, #tpu.memory_space<vmem>>, %arg7: memref<1x32xf32, #tpu.memory_space<vmem>>, %arg8: memref<32x32xbf16, #tpu.memory_space<vmem>>, %arg9: memref<1x32xf32, #tpu.memory_space<vmem>>, %arg10: memref<1x32xbf16, #tpu.memory_space<vmem>>, %arg11: memref<1x1xf32, #tpu.memory_space<vmem>>, %arg12: memref<1x256xf32, #tpu.memory_space<vmem>>) attributes {dimension_semantics = [#tpu.dimension_semantics<parallel>], iteration_bounds = array<i64: 8>, scalar_prefetch = 0 : i64, scratch_operands = 0 : i64, tpu.core_type = #tpu.core_type<tc>, window_params = [{transform_indices = @transform_0, window_bounds = array<i64: 256, 16>}, {pipeline_mode = #tpu.pipeline_mode<synchronous>, transform_indices = @transform_1, window_bounds = array<i64: 16, 32>}, {pipeline_mode = #tpu.pipeline_mode<synchronous>, transform_indices = @transform_2, window_bounds = array<i64: 1, 32>}, {pipeline_mode = #tpu.pipeline_mode<synchronous>, transform_indices = @transform_3, window_bounds = array<i64: 32, 32>}, {pipeline_mode = #tpu.pipeline_mode<synchronous>, transform_indices = @transform_4, window_bounds = array<i64: 1, 32>}, {pipeline_mode = #tpu.pipeline_mode<synchronous>, transform_indices = @transform_5, window_bounds = array<i64: 32, 32>}, {pipeline_mode = #tpu.pipeline_mode<synchronous>, transform_indices = @transform_6, window_bounds = array<i64: 1, 32>}, {pipeline_mode = #tpu.pipeline_mode<synchronous>, transform_indices = @transform_7, window_bounds = array<i64: 32, 32>}, {pipeline_mode = #tpu.pipeline_mode<synchronous>, transform_indices = @transform_8, window_bounds = array<i64: 1, 32>}, {pipeline_mode = #tpu.pipeline_mode<synchronous>, transform_indices = @transform_9, window_bounds = array<i64: 1, 32>}, {pipeline_mode = #tpu.pipeline_mode<synchronous>, transform_indices = @transform_10, window_bounds = array<i64: 1, 1>}, {transform_indices = @transform_11, window_bounds = array<i64: 1, 256>}]} {
    %c0 = arith.constant 0 : index
    %c0_0 = arith.constant 0 : index
    %0 = vector.load %arg1[%c0, %c0_0] : memref<256x16xbf16, #tpu.memory_space<vmem>>, vector<256x16xbf16>
    %c0_1 = arith.constant 0 : index
    %c0_2 = arith.constant 0 : index
    %1 = vector.load %arg2[%c0_1, %c0_2] : memref<16x32xbf16, #tpu.memory_space<vmem>>, vector<16x32xbf16>
    %cst = arith.constant dense<0.000000e+00> : vector<256x32xf32>
    %2 = tpu.matmul %0, %1, %cst {dimension_numbers = #tpu.dot_dimension_numbers<[1], [0], [0], [1], [0, 0, 1, 1], [], []>} : vector<256x16xbf16>, vector<16x32xbf16>, vector<256x32xf32> -> vector<256x32xf32>
    %c0_3 = arith.constant 0 : index
    %c0_4 = arith.constant 0 : index
    %3 = vector.load %arg3[%c0_3, %c0_4] : memref<1x32xf32, #tpu.memory_space<vmem>>, vector<1x32xf32>
    %4 = vector.broadcast %3 : vector<1x32xf32> to vector<256x32xf32>
    %5 = arith.addf %2, %4 : vector<256x32xf32>
    %cst_5 = arith.constant 0.000000e+00 : f32
    %6 = vector.broadcast %cst_5 : f32 to vector<256x32xf32>
    %7 = arith.maximumf %5, %6 : vector<256x32xf32>
    %8 = arith.truncf %7 : vector<256x32xf32> to vector<256x32xbf16>
    %c0_6 = arith.constant 0 : index
    %c0_7 = arith.constant 0 : index
    %9 = vector.load %arg4[%c0_6, %c0_7] : memref<32x32xbf16, #tpu.memory_space<vmem>>, vector<32x32xbf16>
    %cst_8 = arith.constant dense<0.000000e+00> : vector<256x32xf32>
    %10 = tpu.matmul %8, %9, %cst_8 {dimension_numbers = #tpu.dot_dimension_numbers<[1], [0], [0], [1], [0, 0, 1, 1], [], []>} : vector<256x32xbf16>, vector<32x32xbf16>, vector<256x32xf32> -> vector<256x32xf32>
    %c0_9 = arith.constant 0 : index
    %c0_10 = arith.constant 0 : index
    %11 = vector.load %arg5[%c0_9, %c0_10] : memref<1x32xf32, #tpu.memory_space<vmem>>, vector<1x32xf32>
    %12 = vector.broadcast %11 : vector<1x32xf32> to vector<256x32xf32>
    %13 = arith.addf %10, %12 : vector<256x32xf32>
    %cst_11 = arith.constant 0.000000e+00 : f32
    %14 = vector.broadcast %cst_11 : f32 to vector<256x32xf32>
    %15 = arith.maximumf %13, %14 : vector<256x32xf32>
    %16 = arith.truncf %15 : vector<256x32xf32> to vector<256x32xbf16>
    %c0_12 = arith.constant 0 : index
    %c0_13 = arith.constant 0 : index
    %17 = vector.load %arg6[%c0_12, %c0_13] : memref<32x32xbf16, #tpu.memory_space<vmem>>, vector<32x32xbf16>
    %cst_14 = arith.constant dense<0.000000e+00> : vector<256x32xf32>
    %18 = tpu.matmul %16, %17, %cst_14 {dimension_numbers = #tpu.dot_dimension_numbers<[1], [0], [0], [1], [0, 0, 1, 1], [], []>} : vector<256x32xbf16>, vector<32x32xbf16>, vector<256x32xf32> -> vector<256x32xf32>
    %c0_15 = arith.constant 0 : index
    %c0_16 = arith.constant 0 : index
    %19 = vector.load %arg7[%c0_15, %c0_16] : memref<1x32xf32, #tpu.memory_space<vmem>>, vector<1x32xf32>
    %20 = vector.broadcast %19 : vector<1x32xf32> to vector<256x32xf32>
    %21 = arith.addf %18, %20 : vector<256x32xf32>
    %cst_17 = arith.constant 0.000000e+00 : f32
    %22 = vector.broadcast %cst_17 : f32 to vector<256x32xf32>
    %23 = arith.maximumf %21, %22 : vector<256x32xf32>
    %24 = arith.truncf %23 : vector<256x32xf32> to vector<256x32xbf16>
    %c0_18 = arith.constant 0 : index
    %c0_19 = arith.constant 0 : index
    %25 = vector.load %arg8[%c0_18, %c0_19] : memref<32x32xbf16, #tpu.memory_space<vmem>>, vector<32x32xbf16>
    %cst_20 = arith.constant dense<0.000000e+00> : vector<256x32xf32>
    %26 = tpu.matmul %24, %25, %cst_20 {dimension_numbers = #tpu.dot_dimension_numbers<[1], [0], [0], [1], [0, 0, 1, 1], [], []>} : vector<256x32xbf16>, vector<32x32xbf16>, vector<256x32xf32> -> vector<256x32xf32>
    %c0_21 = arith.constant 0 : index
    %c0_22 = arith.constant 0 : index
    %27 = vector.load %arg9[%c0_21, %c0_22] : memref<1x32xf32, #tpu.memory_space<vmem>>, vector<1x32xf32>
    %28 = vector.broadcast %27 : vector<1x32xf32> to vector<256x32xf32>
    %29 = arith.addf %26, %28 : vector<256x32xf32>
    %cst_23 = arith.constant 0.000000e+00 : f32
    %30 = vector.broadcast %cst_23 : f32 to vector<256x32xf32>
    %31 = arith.maximumf %29, %30 : vector<256x32xf32>
    %32 = arith.truncf %31 : vector<256x32xf32> to vector<256x32xbf16>
    %c0_24 = arith.constant 0 : index
    %c0_25 = arith.constant 0 : index
    %33 = vector.load %arg10[%c0_24, %c0_25] : memref<1x32xbf16, #tpu.memory_space<vmem>>, vector<1x32xbf16>
    %cst_26 = arith.constant dense<0.000000e+00> : vector<1x256xf32>
    %34 = tpu.matmul %33, %32, %cst_26 {dimension_numbers = #tpu.dot_dimension_numbers<[1], [1], [0], [0], [0, 0, 1, 0], [], []>} : vector<1x32xbf16>, vector<256x32xbf16>, vector<1x256xf32> -> vector<1x256xf32>
    %c0_27 = arith.constant 0 : index
    %c0_28 = arith.constant 0 : index
    %35 = vector.load %arg11[%c0_27, %c0_28] : memref<1x1xf32, #tpu.memory_space<vmem>>, vector<1x1xf32>
    %36 = vector.broadcast %35 : vector<1x1xf32> to vector<1x256xf32>
    %37 = arith.addf %34, %36 : vector<1x256xf32>
    %c0_29 = arith.constant 0 : index
    %c0_30 = arith.constant 0 : index
    %38 = vector.load %arg12[%c0_29, %c0_30] : memref<1x256xf32, #tpu.memory_space<vmem>>, vector<1x256xf32>
    tpu.vector_store %arg12[%c0_29, %c0_30], %37 {strides = array<i32>} : memref<1x256xf32, #tpu.memory_space<vmem>>, vector<1x256xf32>,
    return
  }
  func.func @transform_0(%arg0: i32) -> (i32, i32) {
    %c0_i32 = arith.constant 0 : i32
    %c0_i32_0 = arith.constant 0 : i32
    return %arg0, %c0_i32 : i32, i32
  }
  func.func @transform_1(%arg0: i32) -> (i32, i32) {
    %c0_i32 = arith.constant 0 : i32
    %c0_i32_0 = arith.constant 0 : i32
    %c0_i32_1 = arith.constant 0 : i32
    return %c0_i32, %c0_i32_0 : i32, i32
  }
  func.func @transform_2(%arg0: i32) -> (i32, i32) {
    %c0_i32 = arith.constant 0 : i32
    %c0_i32_0 = arith.constant 0 : i32
    %c0_i32_1 = arith.constant 0 : i32
    return %c0_i32, %c0_i32_0 : i32, i32
  }
  func.func @transform_3(%arg0: i32) -> (i32, i32) {
    %c0_i32 = arith.constant 0 : i32
    %c0_i32_0 = arith.constant 0 : i32
    %c0_i32_1 = arith.constant 0 : i32
    return %c0_i32, %c0_i32_0 : i32, i32
  }
  func.func @transform_4(%arg0: i32) -> (i32, i32) {
    %c0_i32 = arith.constant 0 : i32
    %c0_i32_0 = arith.constant 0 : i32
    %c0_i32_1 = arith.constant 0 : i32
    return %c0_i32, %c0_i32_0 : i32, i32
  }
  func.func @transform_5(%arg0: i32) -> (i32, i32) {
    %c0_i32 = arith.constant 0 : i32
    %c0_i32_0 = arith.constant 0 : i32
    %c0_i32_1 = arith.constant 0 : i32
    return %c0_i32, %c0_i32_0 : i32, i32
  }
  func.func @transform_6(%arg0: i32) -> (i32, i32) {
    %c0_i32 = arith.constant 0 : i32
    %c0_i32_0 = arith.constant 0 : i32
    %c0_i32_1 = arith.constant 0 : i32
    return %c0_i32, %c0_i32_0 : i32, i32
  }
  func.func @transform_7(%arg0: i32) -> (i32, i32) {
    %c0_i32 = arith.constant 0 : i32
    %c0_i32_0 = arith.constant 0 : i32
    %c0_i32_1 = arith.constant 0 : i32
    return %c0_i32, %c0_i32_0 : i32, i32
  }
  func.func @transform_8(%arg0: i32) -> (i32, i32) {
    %c0_i32 = arith.constant 0 : i32
    %c0_i32_0 = arith.constant 0 : i32
    %c0_i32_1 = arith.constant 0 : i32
    return %c0_i32, %c0_i32_0 : i32, i32
  }
  func.func @transform_9(%arg0: i32) -> (i32, i32) {
    %c0_i32 = arith.constant 0 : i32
    %c0_i32_0 = arith.constant 0 : i32
    %c0_i32_1 = arith.constant 0 : i32
    return %c0_i32, %c0_i32_0 : i32, i32
  }
  func.func @transform_10(%arg0: i32) -> (i32, i32) {
    %c0_i32 = arith.constant 0 : i32
    %c0_i32_0 = arith.constant 0 : i32
    %c0_i32_1 = arith.constant 0 : i32
    return %c0_i32, %c0_i32_0 : i32, i32
  }
  func.func @transform_11(%arg0: i32) -> (i32, i32) {
    %c0_i32 = arith.constant 0 : i32
    %c0_i32_0 = arith.constant 0 : i32
    return %c0_i32, %arg0 : i32, i32
  }
}

</mosaic_0001>

<bundles_post_ra>
// kernel: tpu_custom_call.1
= control target key start
LH: loop header
LB: loop body
LE: loop exit
PB: predicated region body
PF: predicated region fallthrough
CT: control target
= control target key end

     0   :  { %s2755_s0 = inlined_call_operand.vmem [shape: bf16[2048,16], index: 0, kind: input, shape index: {}]   ;;  %s2756_s1 = inlined_call_operand.vmem [shape: bf16[16,32], index: 1, kind: input, shape index: {}]   ;;  %s2757_s2 = inlined_call_operand.vmem [shape: f32[1,32], index: 2, kind: input, shape index: {}]   ;;  %s2758_s3 = inlined_call_operand.vmem [shape: bf16[32,32], index: 3, kind: input, shape index: {}]   ;;  %s2759_s4 = inlined_call_operand.vmem [shape: f32[1,32], index: 4, kind: input, shape index: {}]   ;;  %s2760_s5 = inlined_call_operand.vmem [shape: bf16[32,32], index: 5, kind: input, shape index: {}]   ;;  %s2761_s6 = inlined_call_operand.vmem [shape: f32[1,32], index: 6, kind: input, shape index: {}]   ;;  %s2762_s7 = inlined_call_operand.vmem [shape: bf16[32,32], index: 7, kind: input, shape index: {}]   ;;  %s2763_s8 = inlined_call_operand.vmem [shape: f32[1,32], index: 8, kind: input, shape index: {}]   ;;  %s2764_s9 = inlined_call_operand.vmem [shape: bf16[1,32], index: 9, kind: input, shape index: {}]   ;;  %s2765_s10 = inlined_call_operand.<no memory space> [shape: f32[1,1], index: 10, kind: input, shape index: {}]   ;;  %s2766_s11 = inlined_call_operand.hbm [shape: f32[1,2048], index: 11, kind: output, shape index: {}]  }
   0x1   :  { %v16_v0 = vstv %s2765_s10 }
   0x2   :  { %17 = vst [vmem:[#allocation2] sm:$0x1] %v16_v0 }
   0x3   :  { %18 = vsyncpa [#allocation4], 0 }
   0x4   :  { %20 = vsyncpa [#allocation4 + $0x1], 0  ;;  %s2356_s19 = smov 0   ;;  %s2358_s20 = smov 0  }
   0x5   :  { %s2360_s21 = smov 0   ;;  %s2362_s22 = smov 0  }
   0x6 LB: > { %s1816_s10 = sadd.s32 4294967295, %s2288_s22   ;;  %s1817_s23 = sadd.s32 4294967294, %s2288_s22   ;;  %s2288_s22 = sphi %s2362_s22, %s2772_s22   ;;  %s2284_s21 = sphi %s2360_s21, %s2771_s21   ;;  %s2280_s20 = sphi %s2358_s20, %s2770_s20   ;;  %s2276_s19 = sphi %s2356_s19, %s2769_s19  }
   0x7   : > { %s2379_s24 = sadd.s32 1, %s2288_s22   ;;  %s269_s25 = sadd.s32 1, %s2284_s21 }
   0x8   : > { %s266_s26 = ssub.s32 %s2288_s22, %s2379_s24  ;;  %p279_p0 = scmp.ne.s32.totalorder %s2284_s21, %s2280_s20 }
   0x9   : > { %p267_p1 = scmp.eq.s32.totalorder %s266_s26, 0  ;;  %p280_p2 = scmp.eq.s32.totalorder %s1816_s10, 7 }
   0xa   : > { %p285_p3 = scmp.ne.s32.totalorder %s2280_s20, %s2276_s19  ;;  %p286_p4 = scmp.eq.s32.totalorder %s1817_s23, 7 }
   0xb   : > { %s2389_s27 = scalar_select %p267_p1, %s2284_s21, %s269_s25  }
   0xc   : > { %p2391_p5 = por %p280_p2, %p279_p0  ;;  %p2395_p6 = por %p286_p4, %p285_p3 }
   0xd   : > { %p1820_p7 = scmp.ge.s32.totalorder %s2288_s22, 1  ;;  %p343_p8 = scmp.lt.s32.totalorder %s2288_s22, 9 }
   0xf   : > { %p344_p9 = pnand %p1820_p7, %p343_p8 }
  0x10   : > { %v2203_v1 = vld [vmem:[%s2756_s1] sm:$0xff] (!%p344_p9)   ;;  %s2404_s13 = sshll.u32 (!%p344_p9), %s1816_s10, 5  ;;  %vm518_vm0 = vcmask (!%p344_p9), 130048   ;;  %v2221_v19 = vld [vmem:[%s2758_s3 + $0x8] sm:$0xff] (!%p344_p9)   ;;  %vm799_vm1 = vcmask (!%p344_p9), 261120   ;;  %s380_s10 = sand.u32 (!%p344_p9), 1, %s2280_s20  }
  0x11   : > { %347 = sbr.rel (%p344_p9) target bundleno = 1248 (0x4e0), region = 64  ;;  %p384_p10 = scmp.lt.s32.totalorder (!%p344_p9), %s2404_s13, 255  ;;  %2011 = vmatprep.subr.bf16.mxu0 (!%p344_p9), %v2203_v1  ;;  %v2220_v18 = vld [vmem:[%s2758_s3] sm:$0xff] (!%p344_p9)   ;;  %v2223_v21 = vld [vmem:[%s2760_s5 + $0x8] sm:$0xff] (!%p344_p9)  }
  0x12   : > { %2012 = vmatpush3.bf16.msra.mxu0 (!%p344_p9), %v2203_v1  ;;  %2045 = vmatprep.subr.bf16.mxu1 (!%p344_p9), %v2220_v18  ;;  %v2222_v20 = vld [vmem:[%s2760_s5] sm:$0xff] (!%p344_p9)   ;;  %s1821_s23 = sshll.u32 (!%p344_p9), %s380_s10, 1  ;;  %s2292_s17 = smov (!%p344_p9), [#allocation3]  }
  0x13   : > { %2046 = vmatpush3.bf16.msra.mxu1 (!%p344_p9), %v2220_v18  ;;  %2081 = vmatprep.subr.bf16.mxu0 (!%p344_p9), %v2222_v20  ;;  %v2460_v22 = vld [vmem:[%s2757_s2] ss:$0 sm:$0xff] (!%p344_p9)  ;;  %s382_s25 = scalar_lea.vmem (!%p344_p9), [#allocation3], %s1821_s23 }
  0x14   : > { %2047 = vmatprep.subr.bf16.mxu1 (!%p344_p9), %v2221_v19  ;;  %s1758_s26 = sshll.u32 (!%p344_p9), %s382_s25, 4  ;;  %s2715_s26 = int_to_ptr.vmem [resolvable:$true] %s1758_s26 }
  0x15   : > { %s2226_s16 = scalar_lea.vmem (!%p344_p9), %s2715_s26, 32 }
  0x16   : > { %p2227_p11 = scmp.ne.s32.totalorder (!%p344_p9), %s2715_s26, %s2226_s16 }
  0x17   : > { %2048 = vmatpush3.bf16.msra.mxu1 (!%p344_p9), %v2221_v19 }
  0x18   : > { %s385_s14 = scalar_select %p384_p10, %s2404_s13, 255 }
  0x19   : > { %p2228_p12 = pnand %p2227_p11, %p2391_p5 }
  0x1a   : > { %s1823_s15 = sshll.u32 %s385_s14, 2  ;;  %s2713_s14 = scalar_lea.hbm %s2766_s11, %s2404_s13 }
  0x1b   : > { %s2411_s18 = scalar_lea.vmem %s2755_s0, %s1823_s15  ;;  %s1744_s15 = scalar_lea.sflag [#allocation4], %s380_s10 }
  0x1c   : > { %v2204_v2 = vld [vmem:[%s2411_s18] sm:$0xff]   ;;  %v2205_v3 = vld [vmem:[%s2411_s18 + $0x8] sm:$0xff]   ;;  %v2206_v4 = vld [vmem:[%s2411_s18 + $0x10] sm:$0xff]   ;;  %p2229_p13 = pneg %p2228_p12 }
  0x1d   : > { %2013 = vmatprep.mubr.msk.bf16.mxu0 %vm518_vm0, %v2204_v2  ;;  %v2207_v5 = vld [vmem:[%s2411_s18 + $0x18] sm:$0xff]   ;;  %v2208_v6 = vld [vmem:[%s2411_s18 + $0x20] sm:$0xff]   ;;  %v2209_v7 = vld [vmem:[%s2411_s18 + $0x28] sm:$0xff]  }
  0x1e   : > { %2014 = vmatmul.mubr.msk.bf16.vlgmr.msra.gmra.mrb[0].mxu0 %vm518_vm0, %v2205_v3  ;;  %v2210_v8 = vld [vmem:[%s2411_s18 + $0x30] sm:$0xff]   ;;  %v2211_v9 = vld [vmem:[%s2411_s18 + $0x38] sm:$0xff]   ;;  %v2212_v10 = vld [vmem:[%s2411_s18 + $0x40] sm:$0xff]  }
  0x1f   : > { %2017 = vmatprep.mubr.msk.bf16.mxu0 %vm518_vm0, %v2206_v4  ;;  %v2213_v11 = vld [vmem:[%s2411_s18 + $0x48] sm:$0xff]   ;;  %v2214_v12 = vld [vmem:[%s2411_s18 + $0x50] sm:$0xff]   ;;  %v2215_v13 = vld [vmem:[%s2411_s18 + $0x58] sm:$0xff]   ;;  %2082 = vmatpush3.bf16.msra.mxu0 %v2222_v20 }
  0x20   : > { %v2216_v14 = vld [vmem:[%s2411_s18 + $0x60] sm:$0xff]   ;;  %v2217_v15 = vld [vmem:[%s2411_s18 + $0x68] sm:$0xff]   ;;  %v2218_v16 = vld [vmem:[%s2411_s18 + $0x70] sm:$0xff]   ;;  %2083 = vmatprep.subr.bf16.mxu0 %v2223_v21 }
  0x21   : > { %v2219_v17 = vld [vmem:[%s2411_s18 + $0x78] sm:$0xff]   ;;  %s2230_s18 = sshll.u32 %s2292_s17, 4  ;;  %s2231_s18 = int_to_ptr.vmem [resolvable:$false] %s2230_s18 }
  0x22   : > { %s2232_s23 = scalar_lea.vmem %s2231_s18, 64  ;;  %p2233_p0 = scmp.lt.s32.totalorder %s2715_s26, %s2231_s18 }
  0x23   : > { %2084 = vmatpush3.bf16.msra.mxu0 %v2223_v21  ;;  %p2234_p1 = scmp.lt.s32.totalorder %s2232_s23, %s2226_s16 }
  0x25   : > { %p2235_p2 = por %p2234_p1, %p2233_p0 }
  0x26   : > { %2018 = vmatmul.mubr.msk.bf16.gmra.mrb[4].mxu0 %vm518_vm0, %v2207_v5 }
  0x27   : > { %2021 = vmatprep.mubr.msk.bf16.mxu0 %vm518_vm0, %v2208_v6  ;;  %p2236_p3 = pnand %p2235_p2, %p2229_p13 }
  0x2e   : > { %2022 = vmatmul.mubr.msk.bf16.gmra.mrb[8].mxu0 %vm518_vm0, %v2209_v7 }
  0x2f   : > { %2025 = vmatprep.mubr.msk.bf16.mxu0 %vm518_vm0, %v2210_v8 }
  0x36   : > { %2026 = vmatmul.mubr.msk.bf16.gmra.mrb[12].mxu0 %vm518_vm0, %v2211_v9 }
  0x37   : > { %2029 = vmatprep.mubr.msk.bf16.mxu0 %vm518_vm0, %v2212_v10 }
  0x3e   : > { %2030 = vmatmul.mubr.msk.bf16.gmra.mrb[16].mxu0 %vm518_vm0, %v2213_v11 }
  0x3f   : > { %2033 = vmatprep.mubr.msk.bf16.mxu0 %vm518_vm0, %v2214_v12 }
  0x46   : > { %2034 = vmatmul.mubr.msk.bf16.gmra.mrb[20].mxu0 %vm518_vm0, %v2215_v13 }
  0x47   : > { %2037 = vmatprep.mubr.msk.bf16.mxu0 %vm518_vm0, %v2216_v14 }
  0x4e   : > { %2038 = vmatmul.mubr.msk.bf16.gmra.mrb[24].mxu0 %vm518_vm0, %v2217_v15 }
  0x4f   : > { %2041 = vmatprep.mubr.msk.bf16.mxu0 %vm518_vm0, %v2218_v16 }
  0x56   : > { %2042 = vmatmul.mubr.msk.bf16.gmra.mrb[28].mxu0 %vm518_vm0, %v2219_v17 }
  0xf1   : > { %v2015_v23 = vpop.f32.mrb[0].mxu0 }
  0xf2   : > { %v610_v24 = vadd.f32 %v2015_v23, %v2460_v22  ;;  %v601_v25 = vpop.f32.mrb[1].mxu0 }
  0xf3   : > { %v602_v26 = vadd.f32 %v2460_v22, %v601_v25  ;;  %v2016_v27 = vpop.f32.mrb[2].mxu0 }
  0xf4   : > { %v613_v28 = vadd.f32 %v2016_v27, %v2460_v22  ;;  %v604_v29 = vpop.f32.mrb[3].mxu0  ;;  %v730_v31 = vmax.f32 %v610_v24, 0.0 }
  0xf5   : > { %v605_v30 = vadd.f32 %v2460_v22, %v604_v29  ;;  %v728_v33 = vmax.f32 %v602_v26, 0.0 }
  0xf6   : > { %v731_v32 = vmax.f32 %v613_v28, 0.0 }
  0xf7   : > { %v729_v34 = vmax.f32 %v605_v30, 0.0 }
  0xf8   : > { %v761_v35 = vpack.c.bf16 %v731_v32, %v730_v31 }
  0xf9   : > { %v2019_v36 = vpop.f32.mrb[4].mxu0  ;;  %v760_v37 = vpack.c.bf16 %v729_v34, %v728_v33 }
  0xfa   : > { %v626_v38 = vadd.f32 %v2019_v36, %v2460_v22  ;;  %v617_v39 = vpop.f32.mrb[5].mxu0 }
  0xfb   : > { %v618_v40 = vadd.f32 %v2460_v22, %v617_v39  ;;  %v2020_v41 = vpop.f32.mrb[6].mxu0  ;;  %2049 = vmatprep.mubr.msk.bf16.mxu1 %vm799_vm1, %v760_v37 }
  0xfc   : > { %v629_v42 = vadd.f32 %v2020_v41, %v2460_v22  ;;  %v620_v43 = vpop.f32.mrb[7].mxu0  ;;  %2050 = vmatmul.mubr.msk.bf16.vlgmr.msra.gmra.mrb[0].mxu1 %vm799_vm1, %v761_v35  ;;  %v734_v45 = vmax.f32 %v626_v38, 0.0 }
  0xfd   : > { %v621_v44 = vadd.f32 %v2460_v22, %v620_v43  ;;  %v732_v47 = vmax.f32 %v618_v40, 0.0 }
  0xfe   : > { %v735_v46 = vmax.f32 %v629_v42, 0.0 }
  0xff   : > { %v733_v48 = vmax.f32 %v621_v44, 0.0 }
 0x100   : > { %v763_v49 = vpack.c.bf16 %v735_v46, %v734_v45 }
 0x101   : > { %v762_v50 = vpack.c.bf16 %v733_v48, %v732_v47  ;;  %v2023_v51 = vpop.f32.mrb[8].mxu0 }
 0x102   : > { %v642_v52 = vadd.f32 %v2023_v51, %v2460_v22  ;;  %v633_v53 = vpop.f32.mrb[9].mxu0 }
 0x103   : > { %v634_v54 = vadd.f32 %v2460_v22, %v633_v53  ;;  %v2024_v55 = vpop.f32.mrb[10].mxu0  ;;  %2053 = vmatprep.mubr.msk.bf16.mxu1 %vm799_vm1, %v762_v50 }
 0x104   : > { %v645_v56 = vadd.f32 %v2024_v55, %v2460_v22  ;;  %v636_v57 = vpop.f32.mrb[11].mxu0  ;;  %2054 = vmatmul.mubr.msk.bf16.gmra.mrb[4].mxu1 %vm799_vm1, %v763_v49  ;;  %v738_v59 = vmax.f32 %v642_v52, 0.0 }
 0x105   : > { %v637_v58 = vadd.f32 %v2460_v22, %v636_v57  ;;  %v736_v61 = vmax.f32 %v634_v54, 0.0 }
 0x106   : > { %v739_v60 = vmax.f32 %v645_v56, 0.0 }
 0x107   : > { %v737_v62 = vmax.f32 %v637_v58, 0.0 }
 0x108   : > { %v765_v63 = vpack.c.bf16 %v739_v60, %v738_v59 }
 0x109   : > { %v764_v0 = vpack.c.bf16 %v737_v62, %v736_v61  ;;  %v2027_v1 = vpop.f32.mrb[12].mxu0 }
 0x10a   : > { %v658_v2 = vadd.f32 %v2027_v1, %v2460_v22  ;;  %v649_v3 = vpop.f32.mrb[13].mxu0 }
 0x10b   : > { %v650_v4 = vadd.f32 %v2460_v22, %v649_v3  ;;  %v2028_v5 = vpop.f32.mrb[14].mxu0  ;;  %2057 = vmatprep.mubr.msk.bf16.mxu1 %vm799_vm1, %v764_v0 }
 0x10c   : > { %v661_v6 = vadd.f32 %v2028_v5, %v2460_v22  ;;  %v652_v7 = vpop.f32.mrb[15].mxu0  ;;  %2058 = vmatmul.mubr.msk.bf16.gmra.mrb[8].mxu1 %vm799_vm1, %v765_v63  ;;  %v742_v9 = vmax.f32 %v658_v2, 0.0 }
 0x10d   : > { %v653_v8 = vadd.f32 %v2460_v22, %v652_v7  ;;  %v740_v11 = vmax.f32 %v650_v4, 0.0 }
 0x10e   : > { %v743_v10 = vmax.f32 %v661_v6, 0.0 }
 0x10f   : > { %v741_v12 = vmax.f32 %v653_v8, 0.0  ;;  %v2224_v8 = vld [vmem:[%s2762_s7] sm:$0xff]  }
 0x110   : > { %v767_v13 = vpack.c.bf16 %v743_v10, %v742_v9  ;;  %v2225_v9 = vld [vmem:[%s2762_s7 + $0x8] sm:$0xff]   ;;  %2117 = vmatprep.subr.bf16.mxu1 %v2224_v8 }
 0x111   : > { %v766_v14 = vpack.c.bf16 %v741_v12, %v740_v11  ;;  %v2031_v15 = vpop.f32.mrb[16].mxu0  ;;  %2118 = vmatpush3.bf16.msra.mxu1 %v2224_v8 }
 0x112   : > { %v674_v16 = vadd.f32 %v2031_v15, %v2460_v22  ;;  %v665_v17 = vpop.f32.mrb[17].mxu0  ;;  %2119 = vmatprep.subr.bf16.mxu1 %v2225_v9 }
 0x113   : > { %v666_v18 = vadd.f32 %v2460_v22, %v665_v17  ;;  %v2032_v19 = vpop.f32.mrb[18].mxu0  ;;  %2061 = vmatprep.mubr.msk.bf16.mxu1 %vm799_vm1, %v766_v14 }
 0x114   : > { %v677_v20 = vadd.f32 %v2032_v19, %v2460_v22  ;;  %v668_v21 = vpop.f32.mrb[19].mxu0  ;;  %2062 = vmatmul.mubr.msk.bf16.gmra.mrb[12].mxu1 %vm799_vm1, %v767_v13  ;;  %v746_v24 = vmax.f32 %v674_v16, 0.0 }
 0x115   : > { %v669_v23 = vadd.f32 %v2460_v22, %v668_v21  ;;  %v744_v26 = vmax.f32 %v666_v18, 0.0  ;;  %2120 = vmatpush3.bf16.msra.mxu1 %v2225_v9 }
 0x116   : > { %v747_v25 = vmax.f32 %v677_v20, 0.0 }
 0x117   : > { %v745_v27 = vmax.f32 %v669_v23, 0.0 }
 0x118   : > { %v769_v28 = vpack.c.bf16 %v747_v25, %v746_v24 }
 0x119   : > { %v768_v29 = vpack.c.bf16 %v745_v27, %v744_v26  ;;  %v2035_v30 = vpop.f32.mrb[20].mxu0 }
 0x11a   : > { %v690_v31 = vadd.f32 %v2035_v30, %v2460_v22  ;;  %v681_v32 = vpop.f32.mrb[21].mxu0 }
 0x11b   : > { %v682_v33 = vadd.f32 %v2460_v22, %v681_v32  ;;  %v2036_v34 = vpop.f32.mrb[22].mxu0  ;;  %2065 = vmatprep.mubr.msk.bf16.mxu1 %vm799_vm1, %v768_v29 }
 0x11c   : > { %v750_v35 = vmax.f32 %v690_v31, 0.0  ;;  %v693_v36 = vadd.f32 %v2036_v34, %v2460_v22  ;;  %v684_v37 = vpop.f32.mrb[23].mxu0  ;;  %2066 = vmatmul.mubr.msk.bf16.gmra.mrb[16].mxu1 %vm799_vm1, %v769_v28 }
 0x11d   : > { %v748_v38 = vmax.f32 %v682_v33, 0.0  ;;  %v685_v39 = vadd.f32 %v2460_v22, %v684_v37 }
 0x11e   : > { %v751_v40 = vmax.f32 %v693_v36, 0.0 }
 0x11f   : > { %v749_v41 = vmax.f32 %v685_v39, 0.0 }
 0x120   : > { %v771_v42 = vpack.c.bf16 %v751_v40, %v750_v35 }
 0x121   : > { %v770_v43 = vpack.c.bf16 %v749_v41, %v748_v38  ;;  %v2039_v44 = vpop.f32.mrb[24].mxu0 }
 0x122   : > { %v706_v45 = vadd.f32 %v2039_v44, %v2460_v22  ;;  %v697_v46 = vpop.f32.mrb[25].mxu0 }
 0x123   : > { %v698_v47 = vadd.f32 %v2460_v22, %v697_v46  ;;  %2069 = vmatprep.mubr.msk.bf16.mxu1 %vm799_vm1, %v770_v43  ;;  %v2040_v48 = vpop.f32.mrb[26].mxu0 }
 0x124   : > { %v754_v49 = vmax.f32 %v706_v45, 0.0  ;;  %v709_v50 = vadd.f32 %v2040_v48, %v2460_v22  ;;  %2070 = vmatmul.mubr.msk.bf16.gmra.mrb[20].mxu1 %vm799_vm1, %v771_v42  ;;  %v700_v51 = vpop.f32.mrb[27].mxu0 }
 0x125   : > { %v752_v52 = vmax.f32 %v698_v47, 0.0  ;;  %v701_v53 = vadd.f32 %v2460_v22, %v700_v51 }
 0x126   : > { %v755_v54 = vmax.f32 %v709_v50, 0.0 }
 0x127   : > { %v753_v55 = vmax.f32 %v701_v53, 0.0 }
 0x128   : > { %v773_v56 = vpack.c.bf16 %v755_v54, %v754_v49 }
 0x129   : > { %v772_v57 = vpack.c.bf16 %v753_v55, %v752_v52  ;;  %v2043_v58 = vpop.f32.mrb[28].mxu0 }
 0x12a   : > { %v722_v59 = vadd.f32 %v2043_v58, %v2460_v22  ;;  %v713_v60 = vpop.f32.mrb[29].mxu0 }
 0x12b   : > { %2073 = vmatprep.mubr.msk.bf16.mxu1 %vm799_vm1, %v772_v57  ;;  %v714_v61 = vadd.f32 %v2460_v22, %v713_v60  ;;  %v2044_v62 = vpop.f32.mrb[30].mxu0 }
 0x12c   : > { %2074 = vmatmul.mubr.msk.bf16.gmra.mrb[24].mxu1 %vm799_vm1, %v773_v56  ;;  %v758_v63 = vmax.f32 %v722_v59, 0.0  ;;  %v725_v0 = vadd.f32 %v2044_v62, %v2460_v22  ;;  %v716_v1 = vpop.f32.mrb[31].mxu0 }
 0x12d   : > { %v756_v2 = vmax.f32 %v714_v61, 0.0  ;;  %v717_v3 = vadd.f32 %v2460_v22, %v716_v1  ;;  %v2519_v22 = vld [vmem:[%s2759_s4] ss:$0 sm:$0xff] }
 0x12e   : > { %v759_v4 = vmax.f32 %v725_v0, 0.0 }
 0x12f   : > { %v757_v5 = vmax.f32 %v717_v3, 0.0 }
 0x130   : > { %v775_v6 = vpack.c.bf16 %v759_v4, %v758_v63 }
 0x131   : > { %v774_v7 = vpack.c.bf16 %v757_v5, %v756_v2 }
 0x133   : > { %2077 = vmatprep.mubr.msk.bf16.mxu1 %vm799_vm1, %v774_v7 }
 0x134   : > { %2078 = vmatmul.mubr.msk.bf16.gmra.mrb[28].mxu1 %vm799_vm1, %v775_v6 }
 0x1cf   : > { %v2051_v10 = vpop.f32.mrb[0].mxu1 }
 0x1d0   : > { %v891_v11 = vadd.f32 %v2051_v10, %v2519_v22  ;;  %v882_v12 = vpop.f32.mrb[1].mxu1 }
 0x1d1   : > { %v883_v13 = vadd.f32 %v2519_v22, %v882_v12  ;;  %v2052_v14 = vpop.f32.mrb[2].mxu1 }
 0x1d2   : > { %v894_v15 = vadd.f32 %v2052_v14, %v2519_v22  ;;  %v885_v16 = vpop.f32.mrb[3].mxu1  ;;  %v1011_v18 = vmax.f32 %v891_v11, 0.0 }
 0x1d3   : > { %v886_v17 = vadd.f32 %v2519_v22, %v885_v16  ;;  %v1009_v20 = vmax.f32 %v883_v13, 0.0 }
 0x1d4   : > { %v1012_v19 = vmax.f32 %v894_v15, 0.0 }
 0x1d5   : > { %v1010_v21 = vmax.f32 %v886_v17, 0.0 }
 0x1d6   : > { %v1042_v23 = vpack.c.bf16 %v1012_v19, %v1011_v18 }
 0x1d7   : > { %v1041_v24 = vpack.c.bf16 %v1010_v21, %v1009_v20  ;;  %v2055_v25 = vpop.f32.mrb[4].mxu1 }
 0x1d8   : > { %v907_v26 = vadd.f32 %v2055_v25, %v2519_v22  ;;  %v898_v27 = vpop.f32.mrb[5].mxu1 }
 0x1d9   : > { %v899_v28 = vadd.f32 %v2519_v22, %v898_v27  ;;  %v2056_v29 = vpop.f32.mrb[6].mxu1  ;;  %2085 = vmatprep.mubr.msk.bf16.mxu0 %vm799_vm1, %v1041_v24 }
 0x1da   : > { %v910_v30 = vadd.f32 %v2056_v29, %v2519_v22  ;;  %v901_v31 = vpop.f32.mrb[7].mxu1  ;;  %2086 = vmatmul.mubr.msk.bf16.vlgmr.msra.gmra.mrb[32].mxu0 %vm799_vm1, %v1042_v23  ;;  %v1015_v33 = vmax.f32 %v907_v26, 0.0 }
 0x1db   : > { %v902_v32 = vadd.f32 %v2519_v22, %v901_v31  ;;  %v1013_v35 = vmax.f32 %v899_v28, 0.0 }
 0x1dc   : > { %v1016_v34 = vmax.f32 %v910_v30, 0.0 }
 0x1dd   : > { %v1014_v36 = vmax.f32 %v902_v32, 0.0 }
 0x1de   : > { %v1044_v37 = vpack.c.bf16 %v1016_v34, %v1015_v33 }
 0x1df   : > { %v1043_v38 = vpack.c.bf16 %v1014_v36, %v1013_v35  ;;  %v2059_v39 = vpop.f32.mrb[8].mxu1 }
 0x1e0   : > { %v923_v40 = vadd.f32 %v2059_v39, %v2519_v22  ;;  %v914_v41 = vpop.f32.mrb[9].mxu1 }
 0x1e1   : > { %v915_v42 = vadd.f32 %v2519_v22, %v914_v41  ;;  %v2060_v43 = vpop.f32.mrb[10].mxu1  ;;  %2089 = vmatprep.mubr.msk.bf16.mxu0 %vm799_vm1, %v1043_v38 }
 0x1e2   : > { %v926_v44 = vadd.f32 %v2060_v43, %v2519_v22  ;;  %v917_v45 = vpop.f32.mrb[11].mxu1  ;;  %2090 = vmatmul.mubr.msk.bf16.gmra.mrb[36].mxu0 %vm799_vm1, %v1044_v37  ;;  %v1019_v47 = vmax.f32 %v923_v40, 0.0 }
 0x1e3   : > { %v918_v46 = vadd.f32 %v2519_v22, %v917_v45  ;;  %v1017_v49 = vmax.f32 %v915_v42, 0.0 }
 0x1e4   : > { %v1020_v48 = vmax.f32 %v926_v44, 0.0 }
 0x1e5   : > { %v1018_v50 = vmax.f32 %v918_v46, 0.0 }
 0x1e6   : > { %v1046_v51 = vpack.c.bf16 %v1020_v48, %v1019_v47 }
 0x1e7   : > { %v1045_v52 = vpack.c.bf16 %v1018_v50, %v1017_v49  ;;  %v2063_v53 = vpop.f32.mrb[12].mxu1 }
 0x1e8   : > { %v939_v54 = vadd.f32 %v2063_v53, %v2519_v22  ;;  %v930_v55 = vpop.f32.mrb[13].mxu1 }
 0x1e9   : > { %v931_v56 = vadd.f32 %v2519_v22, %v930_v55  ;;  %v2064_v57 = vpop.f32.mrb[14].mxu1  ;;  %2093 = vmatprep.mubr.msk.bf16.mxu0 %vm799_vm1, %v1045_v52 }
 0x1ea   : > { %v942_v58 = vadd.f32 %v2064_v57, %v2519_v22  ;;  %v933_v59 = vpop.f32.mrb[15].mxu1  ;;  %2094 = vmatmul.mubr.msk.bf16.gmra.mrb[40].mxu0 %vm799_vm1, %v1046_v51  ;;  %v1023_v61 = vmax.f32 %v939_v54, 0.0 }
 0x1eb   : > { %v934_v60 = vadd.f32 %v2519_v22, %v933_v59  ;;  %v1021_v63 = vmax.f32 %v931_v56, 0.0 }
 0x1ec   : > { %v1024_v62 = vmax.f32 %v942_v58, 0.0 }
 0x1ed   : > { %v1022_v0 = vmax.f32 %v934_v60, 0.0  ;;  %v2572_v60 = vld [vmem:[%s2761_s6] ss:$0 sm:$0xff] }
 0x1ee   : > { %v1048_v1 = vpack.c.bf16 %v1024_v62, %v1023_v61 }
 0x1ef   : > { %v1047_v2 = vpack.c.bf16 %v1022_v0, %v1021_v63  ;;  %v2067_v3 = vpop.f32.mrb[16].mxu1 }
 0x1f0   : > { %v955_v4 = vadd.f32 %v2067_v3, %v2519_v22  ;;  %v946_v5 = vpop.f32.mrb[17].mxu1 }
 0x1f1   : > { %v947_v6 = vadd.f32 %v2519_v22, %v946_v5  ;;  %v2068_v7 = vpop.f32.mrb[18].mxu1  ;;  %2097 = vmatprep.mubr.msk.bf16.mxu0 %vm799_vm1, %v1047_v2 }
 0x1f2   : > { %v958_v8 = vadd.f32 %v2068_v7, %v2519_v22  ;;  %v949_v9 = vpop.f32.mrb[19].mxu1  ;;  %2098 = vmatmul.mubr.msk.bf16.gmra.mrb[44].mxu0 %vm799_vm1, %v1048_v1  ;;  %v1027_v11 = vmax.f32 %v955_v4, 0.0 }
 0x1f3   : > { %v950_v10 = vadd.f32 %v2519_v22, %v949_v9  ;;  %v1025_v13 = vmax.f32 %v947_v6, 0.0 }
 0x1f4   : > { %v1028_v12 = vmax.f32 %v958_v8, 0.0 }
 0x1f5   : > { %v1026_v14 = vmax.f32 %v950_v10, 0.0 }
 0x1f6   : > { %v1050_v15 = vpack.c.bf16 %v1028_v12, %v1027_v11 }
 0x1f7   : > { %v1049_v16 = vpack.c.bf16 %v1026_v14, %v1025_v13  ;;  %v2071_v17 = vpop.f32.mrb[20].mxu1 }
 0x1f8   : > { %v971_v18 = vadd.f32 %v2071_v17, %v2519_v22  ;;  %v962_v19 = vpop.f32.mrb[21].mxu1 }
 0x1f9   : > { %v963_v20 = vadd.f32 %v2519_v22, %v962_v19  ;;  %v2072_v21 = vpop.f32.mrb[22].mxu1  ;;  %2101 = vmatprep.mubr.msk.bf16.mxu0 %vm799_vm1, %v1049_v16 }
 0x1fa   : > { %v1031_v23 = vmax.f32 %v971_v18, 0.0  ;;  %v974_v24 = vadd.f32 %v2072_v21, %v2519_v22  ;;  %v965_v25 = vpop.f32.mrb[23].mxu1  ;;  %2102 = vmatmul.mubr.msk.bf16.gmra.mrb[48].mxu0 %vm799_vm1, %v1050_v15 }
 0x1fb   : > { %v1029_v26 = vmax.f32 %v963_v20, 0.0  ;;  %v966_v27 = vadd.f32 %v2519_v22, %v965_v25 }
 0x1fc   : > { %v1032_v28 = vmax.f32 %v974_v24, 0.0 }
 0x1fd   : > { %v1030_v29 = vmax.f32 %v966_v27, 0.0 }
 0x1fe   : > { %v1052_v30 = vpack.c.bf16 %v1032_v28, %v1031_v23 }
 0x1ff   : > { %v1051_v31 = vpack.c.bf16 %v1030_v29, %v1029_v26  ;;  %v2075_v32 = vpop.f32.mrb[24].mxu1 }
 0x200   : > { %v987_v33 = vadd.f32 %v2075_v32, %v2519_v22  ;;  %v978_v34 = vpop.f32.mrb[25].mxu1 }
 0x201   : > { %v979_v35 = vadd.f32 %v2519_v22, %v978_v34  ;;  %2105 = vmatprep.mubr.msk.bf16.mxu0 %vm799_vm1, %v1051_v31  ;;  %v2076_v36 = vpop.f32.mrb[26].mxu1 }
 0x202   : > { %v1035_v37 = vmax.f32 %v987_v33, 0.0  ;;  %v990_v38 = vadd.f32 %v2076_v36, %v2519_v22  ;;  %2106 = vmatmul.mubr.msk.bf16.gmra.mrb[52].mxu0 %vm799_vm1, %v1052_v30  ;;  %v981_v39 = vpop.f32.mrb[27].mxu1 }
 0x203   : > { %v1033_v40 = vmax.f32 %v979_v35, 0.0  ;;  %v982_v41 = vadd.f32 %v2519_v22, %v981_v39 }
 0x204   : > { %v1036_v42 = vmax.f32 %v990_v38, 0.0 }
 0x205   : > { %v1034_v43 = vmax.f32 %v982_v41, 0.0 }
 0x206   : > { %v1054_v44 = vpack.c.bf16 %v1036_v42, %v1035_v37 }
 0x207   : > { %v1053_v45 = vpack.c.bf16 %v1034_v43, %v1033_v40  ;;  %v2079_v46 = vpop.f32.mrb[28].mxu1 }
 0x208   : > { %v1003_v47 = vadd.f32 %v2079_v46, %v2519_v22  ;;  %v994_v48 = vpop.f32.mrb[29].mxu1 }
 0x209   : > { %2109 = vmatprep.mubr.msk.bf16.mxu0 %vm799_vm1, %v1053_v45  ;;  %v995_v49 = vadd.f32 %v2519_v22, %v994_v48  ;;  %v2080_v50 = vpop.f32.mrb[30].mxu1 }
 0x20a   : > { %2110 = vmatmul.mubr.msk.bf16.gmra.mrb[56].mxu0 %vm799_vm1, %v1054_v44  ;;  %v1039_v51 = vmax.f32 %v1003_v47, 0.0  ;;  %v1006_v52 = vadd.f32 %v2080_v50, %v2519_v22  ;;  %v997_v53 = vpop.f32.mrb[31].mxu1 }
 0x20b   : > { %v1037_v54 = vmax.f32 %v995_v49, 0.0  ;;  %v998_v55 = vadd.f32 %v2519_v22, %v997_v53 }
 0x20c   : > { %v1040_v56 = vmax.f32 %v1006_v52, 0.0 }
 0x20d   : > { %v1038_v57 = vmax.f32 %v998_v55, 0.0 }
 0x20e   : > { %v1056_v58 = vpack.c.bf16 %v1040_v56, %v1039_v51 }
 0x20f   : > { %v1055_v59 = vpack.c.bf16 %v1038_v57, %v1037_v54 }
 0x211   : > { %2113 = vmatprep.mubr.msk.bf16.mxu0 %vm799_vm1, %v1055_v59 }
 0x212   : > { %2114 = vmatmul.mubr.msk.bf16.gmra.mrb[60].mxu0 %vm799_vm1, %v1056_v58 }
 0x2ad   : > { %v2087_v61 = vpop.f32.mrb[32].mxu0 }
 0x2ae   : > { %v1171_v62 = vadd.f32 %v2087_v61, %v2572_v60  ;;  %v1162_v63 = vpop.f32.mrb[33].mxu0 }
 0x2af   : > { %v1163_v0 = vadd.f32 %v2572_v60, %v1162_v63  ;;  %v2088_v22 = vpop.f32.mrb[34].mxu0 }
 0x2b0   : > { %v1174_v1 = vadd.f32 %v2088_v22, %v2572_v60  ;;  %v1165_v2 = vpop.f32.mrb[35].mxu0  ;;  %v1291_v4 = vmax.f32 %v1171_v62, 0.0 }
 0x2b1   : > { %v1166_v3 = vadd.f32 %v2572_v60, %v1165_v2  ;;  %v1289_v6 = vmax.f32 %v1163_v0, 0.0 }
 0x2b2   : > { %v1292_v5 = vmax.f32 %v1174_v1, 0.0 }
 0x2b3   : > { %v1290_v7 = vmax.f32 %v1166_v3, 0.0 }
 0x2b4   : > { %v1322_v8 = vpack.c.bf16 %v1292_v5, %v1291_v4 }
 0x2b5   : > { %v1321_v9 = vpack.c.bf16 %v1290_v7, %v1289_v6  ;;  %v2091_v10 = vpop.f32.mrb[36].mxu0 }
 0x2b6   : > { %v1187_v11 = vadd.f32 %v2091_v10, %v2572_v60  ;;  %v1178_v12 = vpop.f32.mrb[37].mxu0 }
 0x2b7   : > { %v1179_v13 = vadd.f32 %v2572_v60, %v1178_v12  ;;  %v2092_v14 = vpop.f32.mrb[38].mxu0  ;;  %2121 = vmatprep.mubr.msk.bf16.mxu1 %vm799_vm1, %v1321_v9 }
 0x2b8   : > { %v1190_v15 = vadd.f32 %v2092_v14, %v2572_v60  ;;  %v1181_v16 = vpop.f32.mrb[39].mxu0  ;;  %2122 = vmatmul.mubr.msk.bf16.vlgmr.msra.gmra.mrb[32].mxu1 %vm799_vm1, %v1322_v8  ;;  %v1295_v18 = vmax.f32 %v1187_v11, 0.0 }
 0x2b9   : > { %v1182_v17 = vadd.f32 %v2572_v60, %v1181_v16  ;;  %v1293_v20 = vmax.f32 %v1179_v13, 0.0 }
 0x2ba   : > { %v1296_v19 = vmax.f32 %v1190_v15, 0.0 }
 0x2bb   : > { %v1294_v21 = vmax.f32 %v1182_v17, 0.0 }
 0x2bc   : > { %v1324_v23 = vpack.c.bf16 %v1296_v19, %v1295_v18 }
 0x2bd   : > { %v1323_v24 = vpack.c.bf16 %v1294_v21, %v1293_v20  ;;  %v2095_v25 = vpop.f32.mrb[40].mxu0 }
 0x2be   : > { %v1203_v26 = vadd.f32 %v2095_v25, %v2572_v60  ;;  %v1194_v27 = vpop.f32.mrb[41].mxu0 }
 0x2bf   : > { %v1195_v28 = vadd.f32 %v2572_v60, %v1194_v27  ;;  %v2096_v29 = vpop.f32.mrb[42].mxu0  ;;  %2125 = vmatprep.mubr.msk.bf16.mxu1 %vm799_vm1, %v1323_v24 }
 0x2c0   : > { %v1206_v30 = vadd.f32 %v2096_v29, %v2572_v60  ;;  %v1197_v31 = vpop.f32.mrb[43].mxu0  ;;  %2126 = vmatmul.mubr.msk.bf16.gmra.mrb[36].mxu1 %vm799_vm1, %v1324_v23  ;;  %v1299_v33 = vmax.f32 %v1203_v26, 0.0 }
 0x2c1   : > { %v1198_v32 = vadd.f32 %v2572_v60, %v1197_v31  ;;  %v1297_v35 = vmax.f32 %v1195_v28, 0.0 }
 0x2c2   : > { %v1300_v34 = vmax.f32 %v1206_v30, 0.0 }
 0x2c3   : > { %v1298_v36 = vmax.f32 %v1198_v32, 0.0 }
 0x2c4   : > { %v1326_v37 = vpack.c.bf16 %v1300_v34, %v1299_v33 }
 0x2c5   : > { %v1325_v38 = vpack.c.bf16 %v1298_v36, %v1297_v35  ;;  %v2099_v39 = vpop.f32.mrb[44].mxu0 }
 0x2c6   : > { %v1219_v40 = vadd.f32 %v2099_v39, %v2572_v60  ;;  %v1210_v41 = vpop.f32.mrb[45].mxu0 }
 0x2c7   : > { %v1211_v42 = vadd.f32 %v2572_v60, %v1210_v41  ;;  %v2100_v43 = vpop.f32.mrb[46].mxu0  ;;  %2129 = vmatprep.mubr.msk.bf16.mxu1 %vm799_vm1, %v1325_v38 }
 0x2c8   : > { %v1222_v44 = vadd.f32 %v2100_v43, %v2572_v60  ;;  %v1213_v45 = vpop.f32.mrb[47].mxu0  ;;  %2130 = vmatmul.mubr.msk.bf16.gmra.mrb[40].mxu1 %vm799_vm1, %v1326_v37  ;;  %v1303_v47 = vmax.f32 %v1219_v40, 0.0 }
 0x2c9   : > { %v1214_v46 = vadd.f32 %v2572_v60, %v1213_v45  ;;  %v1301_v49 = vmax.f32 %v1211_v42, 0.0 }
 0x2ca   : > { %v1304_v48 = vmax.f32 %v1222_v44, 0.0 }
 0x2cb   : > { %v1302_v50 = vmax.f32 %v1214_v46, 0.0  ;;  %v2625_v46 = vld [vmem:[%s2764_s9] sm:$0x1] }
 0x2cc   : > { %v1328_v51 = vpack.c.bf16 %v1304_v48, %v1303_v47  ;;  %2009 = vmatprep.mubr.msk.bf16.mxu0 %vm799_vm1, %v2625_v46  ;;  %v1618_v47 = vld [vmem:[#allocation2] sm:$0x1]  ;;  %v2290_v48 = vmov 0  }
 0x2cd   : > { %v1327_v52 = vpack.c.bf16 %v1302_v50, %v1301_v49  ;;  %v2103_v53 = vpop.f32.mrb[48].mxu0  ;;  %2202 = vset.pattern.permute.xlu0 %v2290_v48 }
 0x2ce   : > { %v1235_v54 = vadd.f32 %v2103_v53, %v2572_v60  ;;  %v1226_v55 = vpop.f32.mrb[49].mxu0  ;;  %1621 = vperm.xlu0 %2202, %v1618_v47  }
 0x2cf   : > { %v1227_v56 = vadd.f32 %v2572_v60, %v1226_v55  ;;  %v2104_v57 = vpop.f32.mrb[50].mxu0  ;;  %2133 = vmatprep.mubr.msk.bf16.mxu1 %vm799_vm1, %v1327_v52 }
 0x2d0   : > { %v1238_v58 = vadd.f32 %v2104_v57, %v2572_v60  ;;  %v1229_v59 = vpop.f32.mrb[51].mxu0  ;;  %2134 = vmatmul.mubr.msk.bf16.gmra.mrb[44].mxu1 %vm799_vm1, %v1328_v51  ;;  %v1307_v62 = vmax.f32 %v1235_v54, 0.0 }
 0x2d1   : > { %v1230_v61 = vadd.f32 %v2572_v60, %v1229_v59  ;;  %v1305_v0 = vmax.f32 %v1227_v56, 0.0 }
 0x2d2   : > { %v1308_v63 = vmax.f32 %v1238_v58, 0.0 }
 0x2d3   : > { %v1306_v22 = vmax.f32 %v1230_v61, 0.0 }
 0x2d4   : > { %v1330_v1 = vpack.c.bf16 %v1308_v63, %v1307_v62 }
 0x2d5   : > { %v1329_v2 = vpack.c.bf16 %v1306_v22, %v1305_v0  ;;  %v2107_v3 = vpop.f32.mrb[52].mxu0 }
 0x2d6   : > { %v1251_v4 = vadd.f32 %v2107_v3, %v2572_v60  ;;  %v1242_v5 = vpop.f32.mrb[53].mxu0 }
 0x2d7   : > { %v1243_v6 = vadd.f32 %v2572_v60, %v1242_v5  ;;  %v2108_v7 = vpop.f32.mrb[54].mxu0  ;;  %2137 = vmatprep.mubr.msk.bf16.mxu1 %vm799_vm1, %v1329_v2 }
 0x2d8   : > { %v1254_v8 = vadd.f32 %v2108_v7, %v2572_v60  ;;  %v1245_v9 = vpop.f32.mrb[55].mxu0  ;;  %2138 = vmatmul.mubr.msk.bf16.gmra.mrb[48].mxu1 %vm799_vm1, %v1330_v1  ;;  %v1311_v11 = vmax.f32 %v1251_v4, 0.0 }
 0x2d9   : > { %v1246_v10 = vadd.f32 %v2572_v60, %v1245_v9  ;;  %v1309_v13 = vmax.f32 %v1243_v6, 0.0 }
 0x2da   : > { %v1312_v12 = vmax.f32 %v1254_v8, 0.0 }
 0x2db   : > { %v1310_v14 = vmax.f32 %v1246_v10, 0.0 }
 0x2dc   : > { %v1332_v15 = vpack.c.bf16 %v1312_v12, %v1311_v11 }
 0x2dd   : > { %v1331_v16 = vpack.c.bf16 %v1310_v14, %v1309_v13  ;;  %v2111_v17 = vpop.f32.mrb[56].mxu0 }
 0x2de   : > { %v1267_v18 = vadd.f32 %v2111_v17, %v2572_v60  ;;  %v1258_v19 = vpop.f32.mrb[57].mxu0 }
 0x2df   : > { %v1259_v20 = vadd.f32 %v2572_v60, %v1258_v19  ;;  %2141 = vmatprep.mubr.msk.bf16.mxu1 %vm799_vm1, %v1331_v16  ;;  %v2112_v21 = vpop.f32.mrb[58].mxu0 }
 0x2e0   : > { %v1315_v23 = vmax.f32 %v1267_v18, 0.0  ;;  %v1270_v24 = vadd.f32 %v2112_v21, %v2572_v60  ;;  %2142 = vmatmul.mubr.msk.bf16.gmra.mrb[52].mxu1 %vm799_vm1, %v1332_v15  ;;  %v1261_v25 = vpop.f32.mrb[59].mxu0 }
 0x2e1   : > { %v1313_v26 = vmax.f32 %v1259_v20, 0.0  ;;  %v1262_v27 = vadd.f32 %v2572_v60, %v1261_v25 }
 0x2e2   : > { %v1316_v28 = vmax.f32 %v1270_v24, 0.0 }
 0x2e3   : > { %v1314_v29 = vmax.f32 %v1262_v27, 0.0 }
 0x2e4   : > { %v1334_v30 = vpack.c.bf16 %v1316_v28, %v1315_v23 }
 0x2e5   : > { %v1333_v31 = vpack.c.bf16 %v1314_v29, %v1313_v26  ;;  %v2115_v32 = vpop.f32.mrb[60].mxu0 }
 0x2e6   : > { %v1283_v33 = vadd.f32 %v2115_v32, %v2572_v60  ;;  %v1274_v34 = vpop.f32.mrb[61].mxu0 }
 0x2e7   : > { %2145 = vmatprep.mubr.msk.bf16.mxu1 %vm799_vm1, %v1333_v31  ;;  %v1275_v35 = vadd.f32 %v2572_v60, %v1274_v34  ;;  %v2116_v36 = vpop.f32.mrb[62].mxu0 }
 0x2e8   : > { %2146 = vmatmul.mubr.msk.bf16.gmra.mrb[56].mxu1 %vm799_vm1, %v1334_v30  ;;  %v1319_v37 = vmax.f32 %v1283_v33, 0.0  ;;  %v1286_v38 = vadd.f32 %v2116_v36, %v2572_v60  ;;  %v1277_v39 = vpop.f32.mrb[63].mxu0 }
 0x2e9   : > { %v1317_v40 = vmax.f32 %v1275_v35, 0.0  ;;  %v1278_v41 = vadd.f32 %v2572_v60, %v1277_v39  ;;  %v2632_v60 = vld [vmem:[%s2763_s8] ss:$0 sm:$0xff] }
 0x2ea   : > { %v1320_v42 = vmax.f32 %v1286_v38, 0.0 }
 0x2eb   : > { %v1318_v43 = vmax.f32 %v1278_v41, 0.0 }
 0x2ec   : > { %v1336_v44 = vpack.c.bf16 %v1320_v42, %v1319_v37 }
 0x2ed   : > { %v1335_v45 = vpack.c.bf16 %v1318_v43, %v1317_v40 }
 0x2ef   : > { %2149 = vmatprep.mubr.msk.bf16.mxu1 %vm799_vm1, %v1335_v45 }
 0x2f0   : > { %2150 = vmatmul.mubr.msk.bf16.gmra.mrb[60].mxu1 %vm799_vm1, %v1336_v44 }
 0x38b   : > { %v2123_v49 = vpop.f32.mrb[32].mxu1 }
 0x38c   : > { %v1451_v50 = vadd.f32 %v2123_v49, %v2632_v60  ;;  %v1442_v51 = vpop.f32.mrb[33].mxu1 }
 0x38d   : > { %v1443_v52 = vadd.f32 %v2632_v60, %v1442_v51  ;;  %v2124_v53 = vpop.f32.mrb[34].mxu1 }
 0x38e   : > { %v1454_v54 = vadd.f32 %v2124_v53, %v2632_v60  ;;  %v1445_v55 = vpop.f32.mrb[35].mxu1  ;;  %v1571_v57 = vmax.f32 %v1451_v50, 0.0 }
 0x38f   : > { %v1446_v56 = vadd.f32 %v2632_v60, %v1445_v55  ;;  %v1569_v59 = vmax.f32 %v1443_v52, 0.0 }
 0x390   : > { %v1572_v58 = vmax.f32 %v1454_v54, 0.0 }
 0x391   : > { %v1570_v61 = vmax.f32 %v1446_v56, 0.0 }
 0x392   : > { %v2638_v62 = vpack.c.bf16 %v1572_v58, %v1571_v57 }
 0x393   : > { %v2640_v63 = vpack.c.bf16 %v1570_v61, %v1569_v59  ;;  %v2127_v0 = vpop.f32.mrb[36].mxu1 }
 0x394   : > { %v1467_v22 = vadd.f32 %v2127_v0, %v2632_v60  ;;  %v1458_v1 = vpop.f32.mrb[37].mxu1 }
 0x395   : > { %v1459_v2 = vadd.f32 %v2632_v60, %v1458_v1  ;;  %v2128_v3 = vpop.f32.mrb[38].mxu1 }
 0x396   : > { %v1470_v4 = vadd.f32 %v2128_v3, %v2632_v60  ;;  %v1461_v5 = vpop.f32.mrb[39].mxu1  ;;  %v1575_v7 = vmax.f32 %v1467_v22, 0.0  ;;  %v1632_v22 = vsel %vm799_vm1, %v2640_v63, 0 }
 0x397   : > { %v1462_v6 = vadd.f32 %v2632_v60, %v1461_v5  ;;  %v1573_v9 = vmax.f32 %v1459_v2, 0.0 }
 0x398   : > { %v1576_v8 = vmax.f32 %v1470_v4, 0.0 }
 0x399   : > { %v1574_v10 = vmax.f32 %v1462_v6, 0.0 }
 0x39a   : > { %v2646_v11 = vpack.c.bf16 %v1576_v8, %v1575_v7 }
 0x39b   : > { %v2648_v12 = vpack.c.bf16 %v1574_v10, %v1573_v9  ;;  %v2131_v13 = vpop.f32.mrb[40].mxu1 }
 0x39c   : > { %v1483_v14 = vadd.f32 %v2131_v13, %v2632_v60  ;;  %v1474_v15 = vpop.f32.mrb[41].mxu1 }
 0x39d   : > { %v1475_v16 = vadd.f32 %v2632_v60, %v1474_v15  ;;  %v2132_v17 = vpop.f32.mrb[42].mxu1 }
 0x39e   : > { %v1486_v18 = vadd.f32 %v2132_v17, %v2632_v60  ;;  %v1477_v19 = vpop.f32.mrb[43].mxu1  ;;  %v1579_v21 = vmax.f32 %v1483_v14, 0.0 }
 0x39f   : > { %v1478_v20 = vadd.f32 %v2632_v60, %v1477_v19  ;;  %v1577_v24 = vmax.f32 %v1475_v16, 0.0  ;;  %v1635_v16 = vsel %vm799_vm1, %v2638_v62, 0  ;;  %v1638_v62 = vsel %vm799_vm1, %v2648_v12, 0 }
 0x3a0   : > { %v1580_v23 = vmax.f32 %v1486_v18, 0.0  ;;  %v1641_v12 = vsel %vm799_vm1, %v2646_v11, 0 }
 0x3a1   : > { %v1578_v25 = vmax.f32 %v1478_v20, 0.0 }
 0x3a2   : > { %v2654_v26 = vpack.c.bf16 %v1580_v23, %v1579_v21 }
 0x3a3   : > { %v2656_v27 = vpack.c.bf16 %v1578_v25, %v1577_v24  ;;  %v2135_v28 = vpop.f32.mrb[44].mxu1 }
 0x3a4   : > { %v1499_v29 = vadd.f32 %v2135_v28, %v2632_v60  ;;  %v1490_v30 = vpop.f32.mrb[45].mxu1 }
 0x3a5   : > { %v1491_v31 = vadd.f32 %v2632_v60, %v1490_v30  ;;  %v2136_v32 = vpop.f32.mrb[46].mxu1 }
 0x3a6   : > { %v1502_v33 = vadd.f32 %v2136_v32, %v2632_v60  ;;  %v1493_v34 = vpop.f32.mrb[47].mxu1  ;;  %v1583_v36 = vmax.f32 %v1499_v29, 0.0 }
 0x3a7   : > { %v1494_v35 = vadd.f32 %v2632_v60, %v1493_v34  ;;  %v1581_v38 = vmax.f32 %v1491_v31, 0.0 }
 0x3a8   : > { %v1584_v37 = vmax.f32 %v1502_v33, 0.0 }
 0x3a9   : > { %v1582_v39 = vmax.f32 %v1494_v35, 0.0 }
 0x3aa   : > { %v2662_v40 = vpack.c.bf16 %v1584_v37, %v1583_v36 }
 0x3ab   : > { %v2664_v41 = vpack.c.bf16 %v1582_v39, %v1581_v38  ;;  %v2139_v42 = vpop.f32.mrb[48].mxu1 }
 0x3ac   : > { %v1515_v43 = vadd.f32 %v2139_v42, %v2632_v60  ;;  %v1506_v44 = vpop.f32.mrb[49].mxu1  ;;  %v1653_v11 = vsel %vm799_vm1, %v2662_v40, 0 }
 0x3ad   : > { %v1507_v45 = vadd.f32 %v2632_v60, %v1506_v44  ;;  %v2140_v47 = vpop.f32.mrb[50].mxu1 }
 0x3ae   : > { %v1518_v48 = vadd.f32 %v2140_v47, %v2632_v60  ;;  %v1509_v49 = vpop.f32.mrb[51].mxu1  ;;  %v1587_v51 = vmax.f32 %v1515_v43, 0.0  ;;  %v1650_v47 = vsel %vm799_vm1, %v2664_v41, 0 }
 0x3af   : > { %v1510_v50 = vadd.f32 %v2632_v60, %v1509_v49  ;;  %v1585_v53 = vmax.f32 %v1507_v45, 0.0  ;;  %v1644_v45 = vsel %vm799_vm1, %v2656_v27, 0  ;;  %v1624_v27 = vlaneseq }
 0x3b0   : > { %v1588_v52 = vmax.f32 %v1518_v48, 0.0 }
 0x3b1   : > { %v1586_v54 = vmax.f32 %v1510_v50, 0.0  ;;  %v1625_v48 = vshrl.u32 %v1624_v27, 7  ;;  %v2291_v50 = vmov 1966171168   ;;  %vm1740_vm2 = vcmp.lt.s32.totalorder %v1624_v27, 256 }
 0x3b2   : > { %v1610_v55 = vpack.c.bf16 %v1588_v52, %v1587_v51  ;;  %v1724_v51 = vunpack.c.l.s4 %v2291_v50 }
 0x3b3   : > { %v1609_v56 = vpack.c.bf16 %v1586_v54, %v1585_v53  ;;  %v2143_v57 = vpop.f32.mrb[52].mxu1  ;;  %v1626_v49 = vsub.s32 0, %v1625_v48 }
 0x3b4   : > { %v1531_v58 = vadd.f32 %v2143_v57, %v2632_v60  ;;  %v1522_v59 = vpop.f32.mrb[53].mxu1  ;;  %v1725_v41 = vunpack.c.0.s8 %v1724_v51 }
 0x3b5   : > { %v1523_v61 = vadd.f32 %v2632_v60, %v1522_v59  ;;  %v2144_v0 = vpop.f32.mrb[54].mxu1  ;;  %2153 = vmatprep.subr.msk.bf16.mxu0 %vm799_vm1, %v1609_v56 }
 0x3b6   : > { %v1534_v1 = vadd.f32 %v2144_v0, %v2632_v60  ;;  %v1525_v2 = vpop.f32.mrb[55].mxu1  ;;  %1994 = vmatpush3.bf16.xpose.msra.mxu0 %v1632_v22  ;;  %v1591_v4 = vmax.f32 %v1531_v58, 0.0  ;;  %v1728_v40 = vsub.s32 %v1725_v41, %v1625_v48 }
 0x3b7   : > { %v1526_v3 = vadd.f32 %v2632_v60, %v1525_v2  ;;  %2154 = vmatprep.subr.msk.bf16.mxu0 %vm799_vm1, %v1610_v55  ;;  %v1589_v6 = vmax.f32 %v1523_v61, 0.0 }
 0x3b8   : > { %v1592_v5 = vmax.f32 %v1534_v1, 0.0 }
 0x3b9   : > { %v1590_v7 = vmax.f32 %v1526_v3, 0.0 }
 0x3ba   : > { %v1612_v8 = vpack.c.bf16 %v1592_v5, %v1591_v4 }
 0x3bb   : > { %v1611_v9 = vpack.c.bf16 %v1590_v7, %v1589_v6  ;;  %v2147_v10 = vpop.f32.mrb[56].mxu1 }
 0x3bc   : > { %v1547_v13 = vadd.f32 %v2147_v10, %v2632_v60  ;;  %v1538_v14 = vpop.f32.mrb[57].mxu1 }
 0x3bd   : > { %v1539_v63 = vadd.f32 %v2632_v60, %v1538_v14  ;;  %v2148_v15 = vpop.f32.mrb[58].mxu1 }
 0x3be   : > { %v1595_v17 = vmax.f32 %v1547_v13, 0.0  ;;  %v1550_v18 = vadd.f32 %v2148_v15, %v2632_v60  ;;  %1996 = vmatpush3.bf16.xpose.msra.mxu0 %v1635_v16  ;;  %v1541_v19 = vpop.f32.mrb[59].mxu1 }
 0x3bf   : > { %v1593_v20 = vmax.f32 %v1539_v63, 0.0  ;;  %v1542_v21 = vadd.f32 %v2632_v60, %v1541_v19  ;;  %2155 = vmatprep.subr.msk.bf16.mxu0 %vm799_vm1, %v1611_v9 }
 0x3c0   : > { %v1596_v23 = vmax.f32 %v1550_v18, 0.0 }
 0x3c1   : > { %v1594_v24 = vmax.f32 %v1542_v21, 0.0 }
 0x3c2   : > { %v1614_v25 = vpack.c.bf16 %v1596_v23, %v1595_v17 }
 0x3c3   : > { %v1613_v28 = vpack.c.bf16 %v1594_v24, %v1593_v20  ;;  %v2151_v29 = vpop.f32.mrb[60].mxu1 }
 0x3c4   : > { %v1563_v30 = vadd.f32 %v2151_v29, %v2632_v60  ;;  %v1554_v31 = vpop.f32.mrb[61].mxu1 }
 0x3c5   : > { %v1555_v32 = vadd.f32 %v2632_v60, %v1554_v31  ;;  %v2152_v33 = vpop.f32.mrb[62].mxu1 }
 0x3c6   : > { %1998 = vmatpush3.bf16.xpose.msra.mxu0 %v1638_v62  ;;  %v1599_v34 = vmax.f32 %v1563_v30, 0.0  ;;  %v1566_v35 = vadd.f32 %v2152_v33, %v2632_v60  ;;  %v1557_v36 = vpop.f32.mrb[63].mxu1 }
 0x3c7   : > { %2156 = vmatprep.subr.msk.bf16.mxu0 %vm799_vm1, %v1612_v8  ;;  %v1597_v37 = vmax.f32 %v1555_v32, 0.0  ;;  %v1558_v38 = vadd.f32 %v2632_v60, %v1557_v36  ;;  %v1647_v60 = vsel %vm799_vm1, %v2654_v26, 0  ;;  %v1622_v26 = vpop.permute.xlu0 %1621 }
 0x3c8   : > { %v1600_v39 = vmax.f32 %v1566_v35, 0.0  ;;  %v1627_v52 = vrot.slane %v1622_v26, %v1626_v49 }
 0x3c9   : > { %v1598_v42 = vmax.f32 %v1558_v38, 0.0 }
 0x3ca   : > { %v1616_v43 = vpack.c.bf16 %v1600_v39, %v1599_v34 }
 0x3cb   : > { %v1615_v44 = vpack.c.bf16 %v1598_v42, %v1597_v37 }
 0x3ce   : > { %2000 = vmatpush3.bf16.xpose.msra.mxu0 %v1641_v12 }
 0x3cf   : > { %2157 = vmatprep.subr.msk.bf16.mxu0 %vm799_vm1, %v1613_v28 }
 0x3d6   : > { %2002 = vmatpush3.bf16.xpose.msra.mxu0 %v1644_v45 }
 0x3d7   : > { %2158 = vmatprep.subr.msk.bf16.mxu0 %vm799_vm1, %v1614_v25 }
 0x3de   : > { %2004 = vmatpush3.bf16.xpose.msra.mxu0 %v1647_v60 }
 0x3df   : > { %2159 = vmatprep.subr.msk.bf16.mxu0 %vm799_vm1, %v1615_v44 }
 0x3e6   : > { %2006 = vmatpush3.bf16.xpose.msra.mxu0 %v1650_v47 }
 0x3e7   : > { %2160 = vmatprep.subr.msk.bf16.mxu0 %vm799_vm1, %v1616_v43 }
 0x3ee   : > { %2008 = vmatpush3.bf16.xpose.msra.mxu0 %v1653_v11 }
 0x3f5   : > { %2010 = vmatmul.mubr.msk.bf16.vlgmr.msra.gmra.mrb[64].mxu0 %vm799_vm1, %v2625_v46 }
 0x4c8   : > { %v1713_v53 = vpop.f32.mrb[64].mxu0 }
 0x4c9   : > { %v1714_v54 = vadd.f32 %v1713_v53, %v1627_v52  ;;  %v1715_v55 = vpop.f32.mrb[65].mxu0 }
 0x4ca   : > { %v1716_v56 = vadd.f32 %v1715_v55, %v1627_v52  ;;  %v1717_v57 = vpop.f32.mrb[66].mxu0 }
 0x4cb   : > { %v1718_v58 = vpop.f32.mrb[67].mxu0 }
 0x4cc   : > { %v1722_v46 = vcombine.low %v1714_v54, %v1716_v56 }
 0x4ce   : > { %v1729_v59 = vrot.slane %v1722_v46, %v1728_v40 }
 0x4d0   : > { %v1736_v61 = vrot.slane %v1729_v59, %v1728_v40 }
 0x4d2   : > { %1742 = vst.msk [vmem:[%s382_s25] sm:$0x3] %vm1740_vm2, %v1736_v61 }
 0x4d3   : > { %2239 = shalt.err (!%p2236_p3)
}
 0x4d4   : > { %s2240_s13 = scalar_lea.hbm %s2713_s14, 32  ;;  %s2244_s30 = scalar_lea.hbm %s2766_s11, 256 }
 0x4d5   : > { %p2241_p4 = scmp.ne.s32.totalorder %s2713_s14, %s2240_s13  ;;  %p2245_p9 = scmp.lt.u32.totalorder %s2713_s14, %s2766_s11 }
 0x4d6   : > { %p2246_p10 = scmp.lt.u32.totalorder %s2244_s30, %s2240_s13  ;;  %p2248_p12 = scmp.lt.u32.totalorder %s2240_s13, %s2713_s14 }
 0x4d7   : > { %p2242_p7 = pnand %p2241_p4, %p2391_p5 }
 0x4d8   : > { %p2247_p11 = por %p2246_p10, %p2245_p9 }
 0x4d9   : > { %p2243_p8 = pneg %p2242_p7 }
 0x4da   : > { %p2249_p13 = por %p2248_p12, %p2247_p11 }
 0x4dc   : > { %p2250_p0 = pnand %p2249_p13, %p2243_p8 }
 0x4de   : > { %2253 = shalt.err (!%p2250_p0)
}
 0x4df   : > { %2161 = dma.vmem_to_hbm [thread:$0]  (%p2391_p5), %s2715_s26, 32, %s2713_s14, %s1744_s15  }
 0x4e0 PF: > { %p2167_p1 = scmp.ge.s32.totalorder %s2288_s22, 2  ;;  %s1770_s16 = sand.u32 1, %s2276_s19  }
 0x4e1   : > { %s1771_s18 = scalar_lea.sflag [#allocation4], %s1770_s16 }
 0x4e2   : > { %p2164_p2 = pnand %p2167_p1, %p2395_p6 }
 0x4e4   : > { %2271 = dma.done.wait (!%p2164_p2), %s1771_s18, 32  }
 0x4e5   : > { %2273 = vsyncadd (!%p2164_p2), %s1771_s18, 4294967264  ;;  %p23_p3 = scmp.ge.s32.totalorder %s2379_s24, 10   ;;  %s2769_s19 = smov %s2280_s20 }
 0x4e6   : > { %s2770_s20 = smov %s2284_s21  ;;  %s2771_s21 = smov %s2389_s27 }
 0x4e7   : > { %s2772_s22 = smov %s2379_s24  ;;  %25 = sbr.rel (!%p23_p3) target bundleno = 6 (0x6), region = 99 }
 0x4ee   :  { %1776 = vsyncpa [#allocation4], 1 }
 0x4ef   :  { %1778 = vsyncpa [#allocation4 + $0x1], 1 }

</bundles_post_ra>
